<compile_context>
chip_gen: v5e
topology: v5e:2x2
jax: 0.10.0
libtpu: 0.0.40
codegen_flags: <defaults>
</compile_context>

<pallas_src>
import functools

import jax
import jax.numpy as jnp
from jax import lax
from jax.experimental import pallas as pl
from jax.experimental.pallas import tpu as pltpu

EPS = 1e-3        # self.eps
EPS_BN = 1e-5     # self.eps_bn
T_ITERS = 5       # self.T
MOMENTUM = 0.1    # self.momentum


# --------------------------------------------------------------------------
# Kernels
# --------------------------------------------------------------------------
def _stats_kernel(x_ref, gram_ref, sum_ref):
    """Per-batch partial stats: Gram = x @ x.T and sum(x) over hw tiles."""
    @pl.when(pl.program_id(1) == 0)
    def _():
        gram_ref[...] = jnp.zeros_like(gram_ref)
        sum_ref[...] = jnp.zeros_like(sum_ref)

    x = x_ref[...].astype(jnp.float32)                     # (C, THW)
    # Contract on the lane (hw) axis of both operands: x @ x.T
    gram_ref[...] += lax.dot_general(
        x, x, (((1,), (1,)), ((), ())),
        preferred_element_type=jnp.float32)
    sum_ref[...] += jnp.sum(x, axis=-1, keepdims=True)


def _whiten_kernel(wm_ref, bias_ref, x_ref, o_ref):
    """xn_tile = wm' @ x_tile - bias (1/std and centering folded into wm'/bias)."""
    x = x_ref[...].astype(jnp.float32)                     # (C, THW)
    y = jnp.dot(wm_ref[...], x, preferred_element_type=jnp.float32) - bias_ref[...]
    o_ref[...] = y.astype(o_ref.dtype)


# --------------------------------------------------------------------------
# Tiling helpers
# --------------------------------------------------------------------------
def _vmem_budget_bytes():
    """Generation-aware VMEM budget (leave headroom below physical capacity)."""
    try:
        cap = int(pltpu.get_tpu_info().vmem_capacity_bytes)
    except Exception:
        cap = 64 * 1024 * 1024          # conservative (v7x-sized) fallback
    if cap <= 0:
        cap = 64 * 1024 * 1024
    # ~75% of physical, never below 32 MiB, never above 100 MiB.
    return max(32 * 1024 * 1024, min((cap * 3) // 4, 100 * 1024 * 1024))


def _pick_tile_hw(hw_p, C, elem_bytes, vmem_budget):
    """Largest multiple-of-128 divisor of hw_p meeting byte / VMEM targets.

    hw_p must already be a multiple of 128 (the wrapper pads).
    """
    # Target ~4 MiB of streamed input per tile (amortizes per-step overhead
    # when C is small; plateau of the HBM roofline per tile-size sweep data).
    target_tile_bytes = 4 * 1024 * 1024
    t_target = max(128, (target_tile_bytes // max(C * elem_bytes, 1)) // 128 * 128)

    # Pass-2 working set per hw column:
    #   2x double-buffered input tile + 2x double-buffered output tile
    #   + in-kernel f32 temporaries (cast of x, f32 y).
    per_thw = C * (4 * elem_bytes + 8)
    resident = 4 * (2 * C * C + 2 * C) + 2 * 1024 * 1024   # wm/bias/gram + slack
    avail = max(vmem_budget - resident, per_thw * 128)
    t_vmem = max(128, (avail // per_thw) // 128 * 128)

    t = min(hw_p, t_target, t_vmem)
    t = max(128, (t // 128) * 128)
    while hw_p % t != 0:                                   # must divide evenly
        t -= 128
    return t


# --------------------------------------------------------------------------
# Wrapper
# --------------------------------------------------------------------------
@functools.partial(jax.jit, static_argnames=("tile_hw",))
def coritn_se_sigma_single(X, running_mean, running_std, running_projection,
                           tile_hw=None):
    """Training-mode forward of CorItN_SESigma_Single.

    X: (B, C, *spatial) float32 or bfloat16 (NCHW for 4-D input).
    Returns (Xn, new_running_mean, new_running_std, new_running_projection).
    Xn has the same dtype as X; running buffers are updated in float32.
    """
    B, C = X.shape[0], X.shape[1]
    spatial = X.shape[2:]
    hw = 1
    for s in spatial:
        hw *= s

    elem_bytes = jnp.dtype(X.dtype).itemsize
    x3d = X.reshape(B, C, hw)              # free NCHW view, no HBM transpose

    # Pad the spatial axis to a multiple of 128 so tiles stay lane-dense and
    # double-buffered (zero columns contribute nothing to Gram / sum).
    pad = (-hw) % 128
    if pad:
        x3d = jnp.pad(x3d, ((0, 0), (0, 0), (0, pad)))
    hw_p = hw + pad

    d = C
    m = B * hw                              # true sample count (excludes pad)

    vmem_budget = _vmem_budget_bytes()
    if tile_hw is not None:
        thw = tile_hw
        if hw_p % thw != 0:
            raise ValueError(f"tile_hw={thw} must divide padded hw={hw_p}")
    else:
        thw = _pick_tile_hw(hw_p, C, elem_bytes, vmem_budget)
    n_t = hw_p // thw

    # ---- Pass 1: streamed per-batch stats (Gram + sum) ----------------------
    gram_b, sum_b = pl.pallas_call(
        _stats_kernel,
        grid=(B, n_t),
        in_specs=[pl.BlockSpec((None, C, thw), lambda b, t: (b, 0, t))],
        out_specs=(
            pl.BlockSpec((None, C, C), lambda b, t: (b, 0, 0)),
            pl.BlockSpec((None, C, 1), lambda b, t: (b, 0, 0)),
        ),
        out_shape=(
            jax.ShapeDtypeStruct((B, C, C), jnp.float32),
            jax.ShapeDtypeStruct((B, C, 1), jnp.float32),
        ),
        compiler_params=pltpu.CompilerParams(
            dimension_semantics=("parallel", "arbitrary"),
            vmem_limit_bytes=int(vmem_budget)),
        cost_estimate=pl.CostEstimate(
            flops=2 * d * d * B * hw_p, transcendentals=0,
            bytes_accessed=elem_bytes * d * B * hw_p + 4 * B * (d * d + d)),
    )(x3d)

    # ---- Tiny (d, d) math in plain JAX --------------------------------------
    gram = jnp.sum(gram_b, axis=0)                          # (d, d)
    sum_x = jnp.sum(sum_b, axis=0)                          # (d, 1)

    # Single-pass moments: cov_c = sum_i (x_i - mean)(x_i - mean)^T.
    # Guard against cancellation driving the diagonal slightly negative.
    mean = sum_x / m                                        # (d, 1)
    cov_c = gram - m * (mean @ mean.T)                      # (d, d)
    var = jnp.maximum(jnp.diag(cov_c), 0.0) / (m - 1)       # unbiased (torch.std)
    std = jnp.sqrt(var) + EPS_BN                            # (d,)
    inv_std = 1.0 / std
    eye = jnp.eye(d, dtype=jnp.float32)
    sigma = EPS * eye + (cov_c / m) * (inv_std[:, None] * inv_std[None, :])

    trace_inv = 1.0 / jnp.trace(sigma)
    sigma_n = sigma * trace_inv
    P = eye
    for _ in range(T_ITERS):                                # Newton-Schulz, unrolled
        P = 1.5 * P - 0.5 * (P @ P @ P @ sigma_n)
    wm = P * jnp.sqrt(trace_inv)

    # Fold diag(1/std) and the centering into the small matrices:
    #   xn = wm @ diag(1/std) @ (x - mean) = wm' @ x - (wm' @ mean)
    wm_scaled = wm * inv_std[None, :]                       # (d, d)
    bias = wm_scaled @ mean                                 # (d, 1)

    # ---- Pass 2: streamed whitening (native output dtype) -------------------
    xn3d = pl.pallas_call(
        _whiten_kernel,
        grid=(B, n_t),
        in_specs=[
            pl.BlockSpec((C, C), lambda b, t: (0, 0)),
            pl.BlockSpec((C, 1), lambda b, t: (0, 0)),
            pl.BlockSpec((None, C, thw), lambda b, t: (b, 0, t)),
        ],
        out_specs=pl.BlockSpec((None, C, thw), lambda b, t: (b, 0, t)),
        out_shape=jax.ShapeDtypeStruct((B, C, hw_p), X.dtype),
        compiler_params=pltpu.CompilerParams(
            dimension_semantics=("parallel", "parallel"),
            vmem_limit_bytes=int(vmem_budget)),
        cost_estimate=pl.CostEstimate(
            flops=2 * d * d * B * hw_p, transcendentals=0,
            bytes_accessed=2 * elem_bytes * d * B * hw_p + 4 * (d * d + d)),
    )(wm_scaled, bias, x3d)

    if pad:
        xn3d = xn3d[:, :, :hw]
    Xn = xn3d.reshape(X.shape)                              # free view back to NCHW

    # running-buffer updates (module side state; plain-JAX glue)
    new_running_mean = (1.0 - MOMENTUM) * running_mean + MOMENTUM * mean
    new_running_std = (1.0 - MOMENTUM) * running_std + MOMENTUM * std
    new_running_projection = ((1.0 - MOMENTUM) * running_projection
                              + MOMENTUM * sigma)
    # TODO(synk): eval-mode branch (uses running buffers) not kernelized; only
    # the training-mode forward is implemented here.
    return Xn, new_running_mean, new_running_std, new_running_projection


# --------------------------------------------------------------------------
# Pure-JAX reference (PyTorch training-mode forward)
# --------------------------------------------------------------------------
def _reference(X):
    X = X.astype(jnp.float32)
    B, C = X.shape[0], X.shape[1]
    spatial = X.shape[2:]
    perm = (1, 0) + tuple(range(2, X.ndim))
    x = jnp.transpose(X, perm).reshape(C, -1)
    d, m = x.shape
    mean = jnp.mean(x, axis=-1, keepdims=True)
    xc = x - mean
    std = jnp.sqrt(jnp.sum(xc * xc, axis=-1, keepdims=True) / (m - 1)) + EPS_BN
    xcs = xc / std
    eye = jnp.eye(d, dtype=jnp.float32)
    sigma = EPS * eye + (xcs @ xcs.T) / m
    trace_inv = 1.0 / jnp.trace(sigma)
    sigma_n = sigma * trace_inv
    P = eye
    for _ in range(T_ITERS):
        P = 1.5 * P - 0.5 * (P @ P @ P @ sigma_n)
    wm = P * jnp.sqrt(trace_inv)
    xn = wm @ xcs
    return jnp.transpose(xn.reshape((C, B) + spatial), perm)


if __name__ == "__main__":
    key = jax.random.PRNGKey(0)
    B, C, H, W = 2, 8, 16, 16              # num_features = C = 8
    X = jax.random.normal(key, (B, C, H, W), dtype=jnp.float32)

    # deterministic buffer init (as in __init__)
    running_mean = jnp.zeros((C, 1), jnp.float32)
    running_std = jnp.ones((C,), jnp.float32)
    running_projection = jnp.eye(C, dtype=jnp.float32)

    # ---- float32 path: tile_hw=128 -> two hw tiles per batch, exercising the
    # resident accumulator grid -------------------------------------------------
    Xn, rm, rs, rp = coritn_se_sigma_single(
        X, running_mean, running_std, running_projection, tile_hw=128)
    Xn = jax.block_until_ready(Xn)

    ref = _reference(X)
    assert Xn.shape == X.shape
    assert Xn.dtype == X.dtype
    max_err = float(jnp.max(jnp.abs(Xn - ref)))
    assert jnp.allclose(Xn, ref, atol=1e-3, rtol=1e-3), (
        f"f32 mismatch vs reference, max abs err {max_err}")

    # ---- bfloat16 path: native-dtype streaming, f32 accumulation --------------
    Xb = X.astype(jnp.bfloat16)
    Xn_b, _, _, _ = coritn_se_sigma_single(
        Xb, running_mean, running_std, running_projection)
    Xn_b = jax.block_until_ready(Xn_b)
    assert Xn_b.dtype == jnp.bfloat16
    ref_b = _reference(Xb)
    max_err_b = float(jnp.max(jnp.abs(Xn_b.astype(jnp.float32) - ref_b)))
    assert jnp.allclose(Xn_b.astype(jnp.float32), ref_b, atol=1e-1, rtol=5e-2), (
        f"bf16 mismatch vs reference, max abs err {max_err_b}")

    print("KERNEL_OK")
</pallas_src>

<mosaic_0001>
module attributes {stable_mosaic.version = 11 : i64} {
  func.func @_stats_kernel(%arg0: i32, %arg1: i32, %arg2: memref<1x8x128xf32, #tpu.memory_space<vmem>>, %arg3: memref<1x8x8xf32, #tpu.memory_space<vmem>>, %arg4: memref<1x8x1xf32, #tpu.memory_space<vmem>>) attributes {dimension_semantics = [#tpu.dimension_semantics<parallel>, #tpu.dimension_semantics<arbitrary>], iteration_bounds = array<i64: 2, 2>, scalar_prefetch = 0 : i64, scratch_operands = 0 : i64, tpu.core_type = #tpu.core_type<tc>, window_params = [{transform_indices = @transform_0, window_bounds = array<i64: 1, 8, 128>}, {transform_indices = @transform_1, window_bounds = array<i64: 1, 8, 8>}, {transform_indices = @transform_2, window_bounds = array<i64: 1, 8, 1>}]} {
    %c0_i32 = arith.constant 0 : i32
    %0 = arith.cmpi eq, %arg1, %c0_i32 : i32
    %1 = arith.extui %0 : i1 to i32
    %c0_i32_0 = arith.constant 0 : i32
    %2 = arith.cmpi ne, %1, %c0_i32_0 : i32
    scf.if %2 {
      %cst_16 = arith.constant 0.000000e+00 : f32
      %20 = vector.broadcast %cst_16 : f32 to vector<8x8xf32>
      %c0_17 = arith.constant 0 : index
      %c0_18 = arith.constant 0 : index
      %c0_19 = arith.constant 0 : index
      %21 = vector.load %arg3[%c0_17, %c0_18, %c0_19] : memref<1x8x8xf32, #tpu.memory_space<vmem>>, vector<1x8x8xf32>
      %22 = vector.shape_cast %21 : vector<1x8x8xf32> to vector<8x8xf32>
      %23 = vector.shape_cast %20 : vector<8x8xf32> to vector<1x8x8xf32>
      tpu.vector_store %arg3[%c0_17, %c0_18, %c0_19], %23 {strides = array<i32>} : memref<1x8x8xf32, #tpu.memory_space<vmem>>, vector<1x8x8xf32>,
      %cst_20 = arith.constant 0.000000e+00 : f32
      %24 = vector.broadcast %cst_20 : f32 to vector<8x1xf32>
      %c0_21 = arith.constant 0 : index
      %c0_22 = arith.constant 0 : index
      %c0_23 = arith.constant 0 : index
      %25 = vector.load %arg4[%c0_21, %c0_22, %c0_23] : memref<1x8x1xf32, #tpu.memory_space<vmem>>, vector<1x8x1xf32>
      %26 = vector.shape_cast %25 : vector<1x8x1xf32> to vector<8x1xf32>
      %27 = vector.shape_cast %24 : vector<8x1xf32> to vector<1x8x1xf32>
      tpu.vector_store %arg4[%c0_21, %c0_22, %c0_23], %27 {strides = array<i32>} : memref<1x8x1xf32, #tpu.memory_space<vmem>>, vector<1x8x1xf32>,
    } else {
    }
    %c0 = arith.constant 0 : index
    %c0_1 = arith.constant 0 : index
    %c0_2 = arith.constant 0 : index
    %3 = vector.load %arg2[%c0, %c0_1, %c0_2] : memref<1x8x128xf32, #tpu.memory_space<vmem>>, vector<1x8x128xf32>
    %4 = vector.shape_cast %3 : vector<1x8x128xf32> to vector<8x128xf32>
    %c0_3 = arith.constant 0 : index
    %c0_4 = arith.constant 0 : index
    %c0_5 = arith.constant 0 : index
    %5 = vector.load %arg3[%c0_3, %c0_4, %c0_5] : memref<1x8x8xf32, #tpu.memory_space<vmem>>, vector<1x8x8xf32>
    %6 = vector.shape_cast %5 : vector<1x8x8xf32> to vector<8x8xf32>
    %cst = arith.constant dense<0.000000e+00> : vector<8x8xf32>
    %7 = tpu.matmul %4, %4, %cst {dimension_numbers = #tpu.dot_dimension_numbers<[1], [1], [0], [0], [0, 0, 1, 0], [], []>} : vector<8x128xf32>, vector<8x128xf32>, vector<8x8xf32> -> vector<8x8xf32>
    %8 = arith.addf %6, %7 : vector<8x8xf32>
    %c0_6 = arith.constant 0 : index
    %c0_7 = arith.constant 0 : index
    %c0_8 = arith.constant 0 : index
    %9 = vector.load %arg3[%c0_6, %c0_7, %c0_8] : memref<1x8x8xf32, #tpu.memory_space<vmem>>, vector<1x8x8xf32>
    %10 = vector.shape_cast %9 : vector<1x8x8xf32> to vector<8x8xf32>
    %11 = vector.shape_cast %8 : vector<8x8xf32> to vector<1x8x8xf32>
    tpu.vector_store %arg3[%c0_6, %c0_7, %c0_8], %11 {strides = array<i32>} : memref<1x8x8xf32, #tpu.memory_space<vmem>>, vector<1x8x8xf32>,
    %c0_9 = arith.constant 0 : index
    %c0_10 = arith.constant 0 : index
    %c0_11 = arith.constant 0 : index
    %12 = vector.load %arg4[%c0_9, %c0_10, %c0_11] : memref<1x8x1xf32, #tpu.memory_space<vmem>>, vector<1x8x1xf32>
    %13 = vector.shape_cast %12 : vector<1x8x1xf32> to vector<8x1xf32>
    %cst_12 = arith.constant dense<0.000000e+00> : vector<8xf32>
    %14 = vector.multi_reduction <add>, %4, %cst_12 [1] : vector<8x128xf32> to vector<8xf32>
    %15 = vector.shape_cast %14 : vector<8xf32> to vector<8x1xf32>
    %16 = arith.addf %13, %15 : vector<8x1xf32>
    %c0_13 = arith.constant 0 : index
    %c0_14 = arith.constant 0 : index
    %c0_15 = arith.constant 0 : index
    %17 = vector.load %arg4[%c0_13, %c0_14, %c0_15] : memref<1x8x1xf32, #tpu.memory_space<vmem>>, vector<1x8x1xf32>
    %18 = vector.shape_cast %17 : vector<1x8x1xf32> to vector<8x1xf32>
    %19 = vector.shape_cast %16 : vector<8x1xf32> to vector<1x8x1xf32>
    tpu.vector_store %arg4[%c0_13, %c0_14, %c0_15], %19 {strides = array<i32>} : memref<1x8x1xf32, #tpu.memory_space<vmem>>, vector<1x8x1xf32>,
    return
  }
  func.func @transform_0(%arg0: i32, %arg1: i32) -> (i32, i32, i32) {
    %c0_i32 = arith.constant 0 : i32
    %c0_i32_0 = arith.constant 0 : i32
    return %arg0, %c0_i32, %arg1 : i32, i32, i32
  }
  func.func @transform_1(%arg0: i32, %arg1: i32) -> (i32, i32, i32) {
    %c0_i32 = arith.constant 0 : i32
    %c0_i32_0 = arith.constant 0 : i32
    %c0_i32_1 = arith.constant 0 : i32
    return %arg0, %c0_i32, %c0_i32_0 : i32, i32, i32
  }
  func.func @transform_2(%arg0: i32, %arg1: i32) -> (i32, i32, i32) {
    %c0_i32 = arith.constant 0 : i32
    %c0_i32_0 = arith.constant 0 : i32
    %c0_i32_1 = arith.constant 0 : i32
    return %arg0, %c0_i32, %c0_i32_0 : i32, i32, i32
  }
}

module attributes {stable_mosaic.version = 11 : i64} {
  func.func @_whiten_kernel(%arg0: i32, %arg1: i32, %arg2: memref<8x8xf32, #tpu.memory_space<vmem>>, %arg3: memref<8x1xf32, #tpu.memory_space<vmem>>, %arg4: memref<1x8x128xf32, #tpu.memory_space<vmem>>, %arg5: memref<1x8x128xf32, #tpu.memory_space<vmem>>) attributes {dimension_semantics = [#tpu.dimension_semantics<parallel>, #tpu.dimension_semantics<parallel>], iteration_bounds = array<i64: 2, 2>, scalar_prefetch = 0 : i64, scratch_operands = 0 : i64, tpu.core_type = #tpu.core_type<tc>, window_params = [{pipeline_mode = #tpu.pipeline_mode<synchronous>, transform_indices = @transform_0, window_bounds = array<i64: 8, 8>}, {pipeline_mode = #tpu.pipeline_mode<synchronous>, transform_indices = @transform_1, window_bounds = array<i64: 8, 1>}, {transform_indices = @transform_2, window_bounds = array<i64: 1, 8, 128>}, {transform_indices = @transform_3, window_bounds = array<i64: 1, 8, 128>}]} {
    %c0 = arith.constant 0 : index
    %c0_0 = arith.constant 0 : index
    %c0_1 = arith.constant 0 : index
    %0 = vector.load %arg4[%c0, %c0_0, %c0_1] : memref<1x8x128xf32, #tpu.memory_space<vmem>>, vector<1x8x128xf32>
    %1 = vector.shape_cast %0 : vector<1x8x128xf32> to vector<8x128xf32>
    %c0_2 = arith.constant 0 : index
    %c0_3 = arith.constant 0 : index
    %2 = vector.load %arg2[%c0_2, %c0_3] : memref<8x8xf32, #tpu.memory_space<vmem>>, vector<8x8xf32>
    %cst = arith.constant dense<0.000000e+00> : vector<8x128xf32>
    %3 = tpu.matmul %2, %1, %cst {dimension_numbers = #tpu.dot_dimension_numbers<[1], [0], [0], [1], [0, 0, 1, 1], [], []>} : vector<8x8xf32>, vector<8x128xf32>, vector<8x128xf32> -> vector<8x128xf32>
    %c0_4 = arith.constant 0 : index
    %c0_5 = arith.constant 0 : index
    %4 = vector.load %arg3[%c0_4, %c0_5] : memref<8x1xf32, #tpu.memory_space<vmem>>, vector<8x1xf32>
    %5 = vector.broadcast %4 : vector<8x1xf32> to vector<8x128xf32>
    %6 = arith.subf %3, %5 : vector<8x128xf32>
    %c0_6 = arith.constant 0 : index
    %c0_7 = arith.constant 0 : index
    %c0_8 = arith.constant 0 : index
    %7 = vector.load %arg5[%c0_6, %c0_7, %c0_8] : memref<1x8x128xf32, #tpu.memory_space<vmem>>, vector<1x8x128xf32>
    %8 = vector.shape_cast %7 : vector<1x8x128xf32> to vector<8x128xf32>
    %9 = vector.shape_cast %6 : vector<8x128xf32> to vector<1x8x128xf32>
    tpu.vector_store %arg5[%c0_6, %c0_7, %c0_8], %9 {strides = array<i32>} : memref<1x8x128xf32, #tpu.memory_space<vmem>>, vector<1x8x128xf32>,
    return
  }
  func.func @transform_0(%arg0: i32, %arg1: i32) -> (i32, i32) {
    %c0_i32 = arith.constant 0 : i32
    %c0_i32_0 = arith.constant 0 : i32
    %c0_i32_1 = arith.constant 0 : i32
    return %c0_i32, %c0_i32_0 : i32, i32
  }
  func.func @transform_1(%arg0: i32, %arg1: i32) -> (i32, i32) {
    %c0_i32 = arith.constant 0 : i32
    %c0_i32_0 = arith.constant 0 : i32
    %c0_i32_1 = arith.constant 0 : i32
    return %c0_i32, %c0_i32_0 : i32, i32
  }
  func.func @transform_2(%arg0: i32, %arg1: i32) -> (i32, i32, i32) {
    %c0_i32 = arith.constant 0 : i32
    %c0_i32_0 = arith.constant 0 : i32
    return %arg0, %c0_i32, %arg1 : i32, i32, i32
  }
  func.func @transform_3(%arg0: i32, %arg1: i32) -> (i32, i32, i32) {
    %c0_i32 = arith.constant 0 : i32
    %c0_i32_0 = arith.constant 0 : i32
    return %arg0, %c0_i32, %arg1 : i32, i32, i32
  }
}

</mosaic_0001>

<bundles_post_ra>
// kernel: coritn_se_sigma_single.2
= control target key start
LH: loop header
LB: loop body
LE: loop exit
PB: predicated region body
PF: predicated region fallthrough
CT: control target
= control target key end

     0   :  { %s425_s9 = smov 0   ;;  %s427_s10 = smov 0   ;;  %s479_s0 = inlined_call_operand.vmem [shape: f32[2,8,256], index: 0, kind: input, shape index: {}]   ;;  %s480_s1 = inlined_call_operand.vmem [shape: f32[2,8,8], index: 1, kind: output, shape index: {0}]   ;;  %s481_s2 = inlined_call_operand.vmem [shape: f32[2,8,1], index: 2, kind: output, shape index: {1}]  }
   0x1   :  { %s429_s11 = smov 0   ;;  %s431_s12 = smov 0  }
   0x2   :  { %s433_s13 = smov 0  }
   0x3 LB: > { %s22_s14 = sadd.s32 1, %s399_s11  ;;  %s25_s15 = sadd.s32 1, %s403_s12  ;;  %s407_s13 = sphi %s433_s13, %s13_s13   ;;  %s403_s12 = sphi %s431_s12, %s485_s12   ;;  %s399_s11 = sphi %s429_s11, %s484_s11   ;;  %s395_s10 = sphi %s427_s10, %s483_s10   ;;  %s391_s9 = sphi %s425_s9, %s482_s9  }
   0x4   : > { %p23_p0 = scmp.ge.s32.totalorder %s22_s14, 2  ;;  %p320_p1 = scmp.ge.s32.totalorder %s407_s13, 1 }
   0x5   : > { %p132_p2 = scmp.lt.s32.totalorder %s407_s13, 5 }
   0x6   : > { %s487_s14 = smov (%p23_p0, %s22_s14), 0  ;;  %s489_s15 = smov (!%p23_p0, %s25_s15), %s403_s12 }
   0x7   : > { %p133_p3 = pnand %p320_p1, %p132_p2  ;;  %p27_p4 = scmp.ge.s32.totalorder %s489_s15, 2 }
   0x8   : > { %p160_p5 = scmp.lt.s32.totalorder (!%p133_p3), %s395_s10, 1  ;;  %p162_p6 = scmp.lt.s32.totalorder (!%p133_p3), %s391_s9, 1 }
   0x9   : > { %s491_s15 = smov (%p27_p4, %s489_s15), 0  ;;  %136 = sbr.rel (%p133_p3) target bundleno = 160 (0xa0), region = 24 }
   0xa   : > { %p325_p7 = scmp.ne.s32.totalorder (!%p133_p3), %s391_s9, 0 }
   0xe   : > { %s493_s10 = smov (!%p160_p5, %s395_s10), 1 }
   0xf   : > { %s163_s16 = scalar_select %p162_p6, %s391_s9, 1 }
  0x10   : > { %s321_s17 = sshll.u32 %s493_s10, 1  ;;  %s323_s18 = sshll.u32 %s493_s10, 3 }
  0x11   : > { %s165_s19 = sadd.s32 %s321_s17, %s163_s16  ;;  %s171_s22 = scalar_lea.vmem %s480_s1, %s323_s18 }
  0x12   : > { %s322_s23 = sshll.u32 %s165_s19, 3  ;;  %s175_s26 = scalar_lea.vmem %s481_s2, %s323_s18 }
  0x13   : > { %s167_s29 = scalar_lea.vmem %s479_s0, %s322_s23  ;;  %179 = sbr.rel (%p325_p7) target bundleno = 27 (0x1b), region = 28 }
  0x18   : > { %vm180_vm0 = vcmask 64512   ;;  %vm182_vm1 = vcmask 7168   ;;  %v409_v0 = vmov 0.0  }
  0x19   : > { %181 = vst.msk [vmem:[%s171_s22] sm:$0xff] %vm180_vm0, %v409_v0 }
  0x1a   : > { %183 = vst.msk [vmem:[%s175_s26] sm:$0xff] %vm182_vm1, %v409_v0 }
  0x1b PF: > { %v184_v1 = vld [vmem:[%s167_s29] sm:$0xff]  ;;  %vm213_vm2 = vcmask 7168   ;;  %vm207_vm3 = vcmask 64512  }
  0x1c   : > { %201 = vmatpush.xpose.msra.mxu0 %v184_v1  ;;  %210 = vadd.xlane.f32.xlu0 %v184_v1 }
  0x1f   : > { %202 = vmatmul.f32.vlgmr.msra.gmra.mxu0 %v184_v1 }
  0x20   : > { %v185_v5 = vld [vmem:[%s171_s22] sm:$0xff] }
  0x21   : > { %v209_v2 = vld [vmem:[%s175_s26] sm:$0xff] }
  0x8f   : > { %v211_v3 = vpop.xlane.xlu0 %210 }
  0x90   : > { %v212_v4 = vadd.f32 %v211_v3, %v209_v2 }
  0x92   : > { %214 = vst.msk [vmem:[%s175_s26] sm:$0xff] %vm213_vm2, %v212_v4 }
  0x9c   : > { %v203_v6 = vpop.f32.mrf.mxu0 }
  0x9d   : > { %v206_v7 = vadd.f32 %v203_v6, %v185_v5 }
  0x9f   : > { %208 = vst.msk [vmem:[%s171_s22] sm:$0xff] %vm207_vm3, %v206_v7 }
  0xa0 PF: > { %s13_s13 = sadd.s32 1, %s407_s13   ;;  %s482_s9 = smov %s399_s11 }
  0xa1   : > { %p10_p8 = scmp.ge.s32.totalorder %s13_s13, 6   ;;  %s483_s10 = smov %s403_s12 }
  0xa2   : > { %s484_s11 = smov %s487_s14  ;;  %s485_s12 = smov %s491_s15 }
  0xa3   :  { %12 = sbr.rel (!%p10_p8) target bundleno = 3 (0x3), region = 70 }

// kernel: coritn_se_sigma_single.3
= control target key start
LH: loop header
LB: loop body
LE: loop exit
PB: predicated region body
PF: predicated region fallthrough
CT: control target
= control target key end

     0   :  { %s437_s12 = smov 0   ;;  %s439_s13 = smov 0   ;;  %s494_s0 = inlined_call_operand.vmem [shape: f32[8,8], index: 0, kind: input, shape index: {}]   ;;  %s495_s1 = inlined_call_operand.vmem [shape: f32[8,1], index: 1, kind: input, shape index: {}]   ;;  %s496_s2 = inlined_call_operand.vmem [shape: f32[2,8,256], index: 2, kind: input, shape index: {}]   ;;  %s497_s3 = inlined_call_operand.vmem [shape: f32[2,8,256], index: 3, kind: output, shape index: {}]  }
   0x1   :  { %s441_s14 = smov 0   ;;  %s443_s15 = smov 0  }
   0x2   :  { %s445_s16 = smov 0  }
   0x3 LB: > { %s22_s17 = sadd.s32 1, %s406_s14  ;;  %s25_s18 = sadd.s32 1, %s410_s15  ;;  %s414_s16 = sphi %s445_s16, %s13_s16   ;;  %s410_s15 = sphi %s443_s15, %s501_s15   ;;  %s406_s14 = sphi %s441_s14, %s500_s14   ;;  %s402_s13 = sphi %s439_s13, %s499_s13   ;;  %s398_s12 = sphi %s437_s12, %s498_s12  }
   0x4   : > { %p23_p0 = scmp.ge.s32.totalorder %s22_s17, 2  ;;  %p326_p1 = scmp.ge.s32.totalorder %s414_s16, 1 }
   0x5   : > { %p156_p2 = scmp.lt.s32.totalorder %s414_s16, 5 }
   0x6   : > { %s503_s17 = smov (%p23_p0, %s22_s17), 0  ;;  %s505_s18 = smov (!%p23_p0, %s25_s18), %s410_s15 }
   0x7   : > { %p157_p3 = pnand %p326_p1, %p156_p2  ;;  %p27_p4 = scmp.ge.s32.totalorder %s505_s18, 2 }
   0x8   : > { %p186_p5 = scmp.lt.s32.totalorder (!%p157_p3), %s402_s13, 1  ;;  %p188_p6 = scmp.lt.s32.totalorder (!%p157_p3), %s398_s12, 1 }
   0x9   : > { %s507_s18 = smov (%p27_p4, %s505_s18), 0  ;;  %160 = sbr.rel (%p157_p3) target bundleno = 150 (0x96), region = 32 }
   0xe   : > { %v228_v0 = vld [vmem:[%s495_s1] sm:$0xff]  ;;  %v416_v1 = vmov 0   ;;  %s509_s13 = smov (!%p186_p5, %s402_s13), 1  ;;  %s511_s12 = smov (!%p188_p6, %s398_s12), 1  ;;  %vm204_vm0 = vcmask 64512  }
   0xf   : > { %375 = vset.pattern.permute.xlu0 %v416_v1  ;;  %s327_s21 = sshll.u32 %s509_s13, 1  ;;  %v203_v2 = vld [vmem:[%s494_s0] sm:$0xff] }
  0x10   : > { %231 = vperm.xlu0 %375, %v228_v0   ;;  %s191_s22 = sadd.s32 %s327_s21, %s511_s12 }
  0x11   : > { %s328_s23 = sshll.u32 %s191_s22, 3 }
  0x12   : > { %s193_s26 = scalar_lea.vmem %s496_s2, %s328_s23  ;;  %s201_s4 = scalar_lea.vmem %s497_s3, %s328_s23 }
  0x13   : > { %v202_v3 = vld [vmem:[%s193_s26] sm:$0xff] }
  0x14   : > { %223 = vmatpush.msra.mxu0 %v202_v3 }
  0x15   : > { %331 = vmatmul.msk.f32.vlgmr.msra.gmra.mxu0 %vm204_vm0, %v203_v2 }
  0x82   : > { %v232_v4 = vpop.permute.xlu0 %231 }
  0x92   : > { %v225_v5 = vpop.f32.mrf.mxu0 }
  0x93   : > { %v234_v6 = vsub.f32 %v225_v5, %v232_v4 }
  0x95   : > { %235 = vst [vmem:[%s201_s4] sm:$0xff] %v234_v6 }
  0x96 PF: > { %s13_s16 = sadd.s32 1, %s414_s16   ;;  %s498_s12 = smov %s406_s14 }
  0x97   : > { %p10_p7 = scmp.ge.s32.totalorder %s13_s16, 6   ;;  %s499_s13 = smov %s410_s15 }
  0x98   : > { %s500_s14 = smov %s503_s17  ;;  %s501_s15 = smov %s507_s18 }
  0x99   :  { %12 = sbr.rel (!%p10_p7) target bundleno = 3 (0x3), region = 62 }

</bundles_post_ra>
